<compile_context>
chip_gen: v7x
topology: tpu7x:2x2x1
jax: 0.10.0
libtpu: 0.0.40
codegen_flags: <defaults>
</compile_context>

<pallas_src>
import jax
import jax.numpy as jnp
import numpy as np
from jax.experimental import pallas as pl
from jax.experimental.pallas import tpu as pltpu

# ---- module-consistent dims (small test shapes) ----
BATCH = 2
SEQ = 8
DIM = 32
HEADS = 4
HEAD_DIM = DIM // HEADS
MLP_HIDDEN = int(DIM * 4.0)       # mlp_ratio = 4.0
EPS = 1e-5                        # nn.LayerNorm default
SCALE = HEAD_DIM ** -0.5          # qk_scale = None -> head_dim ** -0.5
WQK = 2 * DIM                     # width of the fused [q | k] block
WFUSED = 2 * DIM + HEADS * DIM    # [q | k | Wv@Wp per head]


def _layernorm(x, g, b):
    mu = jnp.mean(x, axis=-1, keepdims=True)
    xc = x - mu
    var = jnp.mean(xc * xc, axis=-1, keepdims=True)
    return xc * jax.lax.rsqrt(var + EPS) * g + b


def block_kernel(x_ref, wfused_ref, vecs_ref, w1_ref, bf1_ref, w2_ref, o_ref):
    bf16 = jnp.bfloat16
    x = x_ref[...]                                           # (SEQ, DIM) f32

    # ---------------- Attention branch ----------------
    xn = _layernorm(x, vecs_ref[0:1, :], vecs_ref[1:2, :])   # f32
    xnb = xn.astype(bf16)

    # single fused projection: [q*scale | k | xn @ (Wv_h @ Wp_h) per head]  -> (SEQ, 192)
    proj = jnp.dot(xnb, wfused_ref[...], preferred_element_type=jnp.float32)

    # per-head scores (scale already folded into Wq); contract last dims -> no transpose
    scores = []
    for h in range(HEADS):
        qh = proj[:, h * HEAD_DIM:(h + 1) * HEAD_DIM].astype(bf16)
        kh = proj[:, DIM + h * HEAD_DIM: DIM + (h + 1) * HEAD_DIM].astype(bf16)
        scores.append(jax.lax.dot_general(
            qh, kh, dimension_numbers=(((1,), (1,)), ((), ())),
            preferred_element_type=jnp.float32))             # (SEQ, SEQ) f32

    # batched softmax over all heads at once (stacked along sublanes)
    s_all = jnp.concatenate(scores, axis=0)                  # (H*SEQ, SEQ) f32
    s_all = s_all - jnp.max(s_all, axis=-1, keepdims=True)
    p_all = jnp.exp(s_all)
    p_all = p_all * pl.reciprocal(jnp.sum(p_all, axis=-1, keepdims=True), approx=True)
    p_all = p_all.astype(bf16)

    # y = sum_h softmax_h @ (xn @ (Wv_h @ Wp_h)), accumulated in one f32 register tile
    y = jnp.zeros((SEQ, DIM), jnp.float32)
    for h in range(HEADS):
        ph = p_all[h * SEQ:(h + 1) * SEQ, :]                 # (SEQ, SEQ) bf16
        vph = proj[:, WQK + h * DIM: WQK + (h + 1) * DIM].astype(bf16)   # (SEQ, DIM)
        y = y + jnp.dot(ph, vph, preferred_element_type=jnp.float32)

    x = x + y + vecs_ref[2:3, :]                             # residual 1 (+ proj bias)

    # ---------------- MLP branch ----------------
    xn2 = _layernorm(x, vecs_ref[3:4, :], vecs_ref[4:5, :])
    h1 = jnp.dot(xn2.astype(bf16), w1_ref[...],
                 preferred_element_type=jnp.float32) + bf1_ref[...]      # (SEQ, HID)
    h1 = jax.nn.gelu(h1, approximate=True)                   # tanh GELU -> single EUP op
    h2 = jnp.dot(h1.astype(bf16), w2_ref[...],
                 preferred_element_type=jnp.float32) + vecs_ref[5:6, :]  # (SEQ, DIM)
    o_ref[...] = (x + h2).astype(o_ref.dtype)                # residual 2


def vit_block(x, params):
    B, N, C = x.shape
    g1, b1, wqkv, wproj, bproj, g2, b2, w1, bf1, w2, bf2 = params
    bf16 = jnp.bfloat16

    # ---- wrapper-side weight plumbing (free XLA ops, not kernel work) ----
    wq = wqkv[:, 0 * C:1 * C] * SCALE            # fold qk scale into Wq
    wk = wqkv[:, 1 * C:2 * C]
    wv = wqkv[:, 2 * C:3 * C]
    # compose Wv_h @ Wp_h in f32 (rank-HEAD_DIM, C x C per head), heads laid along lanes
    wv_h = wv.reshape(C, HEADS, HEAD_DIM)                    # (C, H, hd)
    wp_h = wproj.reshape(HEADS, HEAD_DIM, C)                 # (H, hd, C)
    wvp = jnp.einsum('chd,hdk->chk', wv_h, wp_h).reshape(C, HEADS * C)
    wfused = jnp.concatenate([wq, wk, wvp], axis=1).astype(bf16)   # (C, 192)

    vecs = jnp.concatenate([g1, b1, bproj, g2, b2, bf2], axis=0)   # (6, C) f32
    w1b, w2b = w1.astype(bf16), w2.astype(bf16)

    x2d = x.reshape(B * N, C)
    out2d = pl.pallas_call(
        block_kernel,
        out_shape=jax.ShapeDtypeStruct((B * N, C), x.dtype),
        grid=(B,),
        in_specs=[
            pl.BlockSpec((N, C), lambda b: (b, 0)),            # x: one batch element / program
            pl.BlockSpec((C, WFUSED), lambda b: (0, 0)),       # fused attention weights
            pl.BlockSpec((6, C), lambda b: (0, 0)),            # packed LN / bias vectors
            pl.BlockSpec((C, MLP_HIDDEN), lambda b: (0, 0)),   # fc1 weight
            pl.BlockSpec((1, MLP_HIDDEN), lambda b: (0, 0)),   # fc1 bias
            pl.BlockSpec((MLP_HIDDEN, C), lambda b: (0, 0)),   # fc2 weight
        ],
        out_specs=pl.BlockSpec((N, C), lambda b: (b, 0)),
        compiler_params=pltpu.CompilerParams(
            dimension_semantics=("parallel",)),                # shards across TCs on v7x
    )(x2d, wfused, vecs, w1b, bf1, w2b)
    return out2d.reshape(B, N, C)


def ref_block(x, params):
    """Pure-JAX f32 reference mirroring the PyTorch Block.forward (eval mode)."""
    g1, b1, wqkv, wproj, bproj, g2, b2, w1, bf1, w2, bf2 = params

    def ln(t, g, b):
        mu = t.mean(-1, keepdims=True)
        var = ((t - mu) ** 2).mean(-1, keepdims=True)
        return (t - mu) / jnp.sqrt(var + EPS) * g + b

    B, N, C = x.shape
    xn = ln(x, g1, b1)
    qkv = xn @ wqkv                                          # (B, N, 3C)
    qkv = qkv.reshape(B, N, 3, HEADS, HEAD_DIM).transpose(2, 0, 3, 1, 4)
    q, k, v = qkv[0], qkv[1], qkv[2]                         # (B, H, N, hd)
    attn = (q @ jnp.swapaxes(k, -2, -1)) * SCALE
    attn = jax.nn.softmax(attn, axis=-1)
    y = (attn @ v).transpose(0, 2, 1, 3).reshape(B, N, C)
    y = y @ wproj + bproj
    x = x + y
    xn2 = ln(x, g2, b2)
    h = jax.nn.gelu(xn2 @ w1 + bf1, approximate=False)       # PyTorch nn.GELU = exact erf
    x = x + (h @ w2 + bf2)
    return x


def init_params(key):
    ks = jax.random.split(key, 11)
    std = 0.05
    g1 = 1.0 + 0.05 * jax.random.normal(ks[0], (1, DIM), jnp.float32)
    b1 = 0.05 * jax.random.normal(ks[1], (1, DIM), jnp.float32)
    wqkv = std * jax.random.normal(ks[2], (DIM, 3 * DIM), jnp.float32)
    wproj = std * jax.random.normal(ks[3], (DIM, DIM), jnp.float32)
    bproj = 0.05 * jax.random.normal(ks[4], (1, DIM), jnp.float32)
    g2 = 1.0 + 0.05 * jax.random.normal(ks[5], (1, DIM), jnp.float32)
    b2 = 0.05 * jax.random.normal(ks[6], (1, DIM), jnp.float32)
    w1 = std * jax.random.normal(ks[7], (DIM, MLP_HIDDEN), jnp.float32)
    bf1 = 0.05 * jax.random.normal(ks[8], (1, MLP_HIDDEN), jnp.float32)
    w2 = std * jax.random.normal(ks[9], (MLP_HIDDEN, DIM), jnp.float32)
    bf2 = 0.05 * jax.random.normal(ks[10], (1, DIM), jnp.float32)
    return (g1, b1, wqkv, wproj, bproj, g2, b2, w1, bf1, w2, bf2)


if __name__ == "__main__":
    key = jax.random.PRNGKey(0)
    kx, kp = jax.random.split(key)
    x = jax.random.normal(kx, (BATCH, SEQ, DIM), jnp.float32)
    params = init_params(kp)

    out = jax.block_until_ready(vit_block(x, params))
    assert out.shape == (BATCH, SEQ, DIM)

    ref = ref_block(x, params)
    # bf16 MXU operands (f32 accumulation), composed Wv@Wp, approx reciprocal and
    # tanh-GELU -> small, bounded mismatch vs. the exact f32 reference.
    np.testing.assert_allclose(np.asarray(out), np.asarray(ref), rtol=5e-3, atol=5e-3)
    print("KERNEL_OK")
</pallas_src>

<mosaic_0001>
module attributes {stable_mosaic.version = 11 : i64} {
  func.func @block_kernel(%arg0: i32, %arg1: memref<8x32xf32, #tpu.memory_space<vmem>>, %arg2: memref<32x192xbf16, #tpu.memory_space<vmem>>, %arg3: memref<6x32xf32, #tpu.memory_space<vmem>>, %arg4: memref<32x128xbf16, #tpu.memory_space<vmem>>, %arg5: memref<1x128xf32, #tpu.memory_space<vmem>>, %arg6: memref<128x32xbf16, #tpu.memory_space<vmem>>, %arg7: memref<8x32xf32, #tpu.memory_space<vmem>>) attributes {dimension_semantics = [#tpu.dimension_semantics<parallel>], iteration_bounds = array<i64: 2>, scalar_prefetch = 0 : i64, scratch_operands = 0 : i64, tpu.core_type = #tpu.core_type<tc>, window_params = [{transform_indices = @transform_0, window_bounds = array<i64: 8, 32>}, {pipeline_mode = #tpu.pipeline_mode<synchronous>, transform_indices = @transform_1, window_bounds = array<i64: 32, 192>}, {pipeline_mode = #tpu.pipeline_mode<synchronous>, transform_indices = @transform_2, window_bounds = array<i64: 6, 32>}, {pipeline_mode = #tpu.pipeline_mode<synchronous>, transform_indices = @transform_3, window_bounds = array<i64: 32, 128>}, {pipeline_mode = #tpu.pipeline_mode<synchronous>, transform_indices = @transform_4, window_bounds = array<i64: 1, 128>}, {pipeline_mode = #tpu.pipeline_mode<synchronous>, transform_indices = @transform_5, window_bounds = array<i64: 128, 32>}, {transform_indices = @transform_6, window_bounds = array<i64: 8, 32>}]} {
    %c0 = arith.constant 0 : index
    %c0_0 = arith.constant 0 : index
    %0 = vector.load %arg1[%c0, %c0_0] : memref<8x32xf32, #tpu.memory_space<vmem>>, vector<8x32xf32>
    %c0_1 = arith.constant 0 : index
    %c0_2 = arith.constant 0 : index
    %1 = vector.load %arg3[%c0_1, %c0_2] : memref<6x32xf32, #tpu.memory_space<vmem>>, vector<1x32xf32>
    %c1 = arith.constant 1 : index
    %c0_3 = arith.constant 0 : index
    %2 = vector.load %arg3[%c1, %c0_3] : memref<6x32xf32, #tpu.memory_space<vmem>>, vector<1x32xf32>
    %cst = arith.constant dense<0.000000e+00> : vector<8xf32>
    %3 = vector.multi_reduction <add>, %0, %cst [1] : vector<8x32xf32> to vector<8xf32>
    %4 = vector.shape_cast %3 : vector<8xf32> to vector<8x1xf32>
    %cst_4 = arith.constant 3.200000e+01 : f32
    %5 = vector.broadcast %cst_4 : f32 to vector<8x1xf32>
    %6 = arith.divf %4, %5 : vector<8x1xf32>
    %7 = vector.broadcast %6 : vector<8x1xf32> to vector<8x32xf32>
    %8 = arith.subf %0, %7 : vector<8x32xf32>
    %9 = arith.mulf %8, %8 : vector<8x32xf32>
    %cst_5 = arith.constant dense<0.000000e+00> : vector<8xf32>
    %10 = vector.multi_reduction <add>, %9, %cst_5 [1] : vector<8x32xf32> to vector<8xf32>
    %11 = vector.shape_cast %10 : vector<8xf32> to vector<8x1xf32>
    %cst_6 = arith.constant 3.200000e+01 : f32
    %12 = vector.broadcast %cst_6 : f32 to vector<8x1xf32>
    %13 = arith.divf %11, %12 : vector<8x1xf32>
    %cst_7 = arith.constant 9.99999974E-6 : f32
    %14 = vector.broadcast %cst_7 : f32 to vector<8x1xf32>
    %15 = arith.addf %13, %14 : vector<8x1xf32>
    %16 = math.rsqrt %15 : vector<8x1xf32>
    %17 = vector.broadcast %16 : vector<8x1xf32> to vector<8x32xf32>
    %18 = arith.mulf %8, %17 : vector<8x32xf32>
    %19 = vector.broadcast %1 : vector<1x32xf32> to vector<8x32xf32>
    %20 = arith.mulf %18, %19 : vector<8x32xf32>
    %21 = vector.broadcast %2 : vector<1x32xf32> to vector<8x32xf32>
    %22 = arith.addf %20, %21 : vector<8x32xf32>
    %23 = arith.truncf %22 : vector<8x32xf32> to vector<8x32xbf16>
    %c0_8 = arith.constant 0 : index
    %c0_9 = arith.constant 0 : index
    %24 = vector.load %arg2[%c0_8, %c0_9] : memref<32x192xbf16, #tpu.memory_space<vmem>>, vector<32x192xbf16>
    %cst_10 = arith.constant dense<0.000000e+00> : vector<8x192xf32>
    %25 = tpu.matmul %23, %24, %cst_10 {dimension_numbers = #tpu.dot_dimension_numbers<[1], [0], [0], [1], [0, 0, 1, 1], [], []>} : vector<8x32xbf16>, vector<32x192xbf16>, vector<8x192xf32> -> vector<8x192xf32>
    %26 = vector.extract_strided_slice %25 {offsets = [0, 0], sizes = [8, 8], strides = [1, 1]} : vector<8x192xf32> to vector<8x8xf32>
    %27 = arith.truncf %26 : vector<8x8xf32> to vector<8x8xbf16>
    %28 = vector.extract_strided_slice %25 {offsets = [0, 32], sizes = [8, 8], strides = [1, 1]} : vector<8x192xf32> to vector<8x8xf32>
    %29 = arith.truncf %28 : vector<8x8xf32> to vector<8x8xbf16>
    %cst_11 = arith.constant dense<0.000000e+00> : vector<8x8xf32>
    %30 = tpu.matmul %27, %29, %cst_11 {dimension_numbers = #tpu.dot_dimension_numbers<[1], [1], [0], [0], [0, 0, 1, 0], [], []>} : vector<8x8xbf16>, vector<8x8xbf16>, vector<8x8xf32> -> vector<8x8xf32>
    %31 = vector.extract_strided_slice %25 {offsets = [0, 8], sizes = [8, 8], strides = [1, 1]} : vector<8x192xf32> to vector<8x8xf32>
    %32 = arith.truncf %31 : vector<8x8xf32> to vector<8x8xbf16>
    %33 = vector.extract_strided_slice %25 {offsets = [0, 40], sizes = [8, 8], strides = [1, 1]} : vector<8x192xf32> to vector<8x8xf32>
    %34 = arith.truncf %33 : vector<8x8xf32> to vector<8x8xbf16>
    %cst_12 = arith.constant dense<0.000000e+00> : vector<8x8xf32>
    %35 = tpu.matmul %32, %34, %cst_12 {dimension_numbers = #tpu.dot_dimension_numbers<[1], [1], [0], [0], [0, 0, 1, 0], [], []>} : vector<8x8xbf16>, vector<8x8xbf16>, vector<8x8xf32> -> vector<8x8xf32>
    %36 = vector.extract_strided_slice %25 {offsets = [0, 16], sizes = [8, 8], strides = [1, 1]} : vector<8x192xf32> to vector<8x8xf32>
    %37 = arith.truncf %36 : vector<8x8xf32> to vector<8x8xbf16>
    %38 = vector.extract_strided_slice %25 {offsets = [0, 48], sizes = [8, 8], strides = [1, 1]} : vector<8x192xf32> to vector<8x8xf32>
    %39 = arith.truncf %38 : vector<8x8xf32> to vector<8x8xbf16>
    %cst_13 = arith.constant dense<0.000000e+00> : vector<8x8xf32>
    %40 = tpu.matmul %37, %39, %cst_13 {dimension_numbers = #tpu.dot_dimension_numbers<[1], [1], [0], [0], [0, 0, 1, 0], [], []>} : vector<8x8xbf16>, vector<8x8xbf16>, vector<8x8xf32> -> vector<8x8xf32>
    %41 = vector.extract_strided_slice %25 {offsets = [0, 24], sizes = [8, 8], strides = [1, 1]} : vector<8x192xf32> to vector<8x8xf32>
    %42 = arith.truncf %41 : vector<8x8xf32> to vector<8x8xbf16>
    %43 = vector.extract_strided_slice %25 {offsets = [0, 56], sizes = [8, 8], strides = [1, 1]} : vector<8x192xf32> to vector<8x8xf32>
    %44 = arith.truncf %43 : vector<8x8xf32> to vector<8x8xbf16>
    %cst_14 = arith.constant dense<0.000000e+00> : vector<8x8xf32>
    %45 = tpu.matmul %42, %44, %cst_14 {dimension_numbers = #tpu.dot_dimension_numbers<[1], [1], [0], [0], [0, 0, 1, 0], [], []>} : vector<8x8xbf16>, vector<8x8xbf16>, vector<8x8xf32> -> vector<8x8xf32>
    %46 = tpu.concatenate %30, %35, %40, %45 in 0 : vector<8x8xf32>, vector<8x8xf32>, vector<8x8xf32>, vector<8x8xf32> -> vector<32x8xf32>
    %cst_15 = arith.constant dense<0xFF800000> : vector<32xf32>
    %47 = vector.multi_reduction <maximumf>, %46, %cst_15 [1] : vector<32x8xf32> to vector<32xf32>
    %48 = vector.shape_cast %47 : vector<32xf32> to vector<32x1xf32>
    %49 = vector.broadcast %48 : vector<32x1xf32> to vector<32x8xf32>
    %50 = arith.subf %46, %49 : vector<32x8xf32>
    %51 = math.exp %50 : vector<32x8xf32>
    %cst_16 = arith.constant dense<0.000000e+00> : vector<32xf32>
    %52 = vector.multi_reduction <add>, %51, %cst_16 [1] : vector<32x8xf32> to vector<32xf32>
    %53 = vector.shape_cast %52 : vector<32xf32> to vector<32x1xf32>
    %54 = tpu.reciprocal %53 {approx = true} : vector<32x1xf32> -> vector<32x1xf32>
    %55 = vector.broadcast %54 : vector<32x1xf32> to vector<32x8xf32>
    %56 = arith.mulf %51, %55 : vector<32x8xf32>
    %57 = arith.truncf %56 : vector<32x8xf32> to vector<32x8xbf16>
    %cst_17 = arith.constant 0.000000e+00 : f32
    %58 = vector.broadcast %cst_17 : f32 to vector<8x32xf32>
    %59 = vector.extract_strided_slice %57 {offsets = [0, 0], sizes = [8, 8], strides = [1, 1]} : vector<32x8xbf16> to vector<8x8xbf16>
    %60 = vector.extract_strided_slice %25 {offsets = [0, 64], sizes = [8, 32], strides = [1, 1]} : vector<8x192xf32> to vector<8x32xf32>
    %61 = arith.truncf %60 : vector<8x32xf32> to vector<8x32xbf16>
    %cst_18 = arith.constant dense<0.000000e+00> : vector<8x32xf32>
    %62 = tpu.matmul %59, %61, %cst_18 {dimension_numbers = #tpu.dot_dimension_numbers<[1], [0], [0], [1], [0, 0, 1, 1], [], []>} : vector<8x8xbf16>, vector<8x32xbf16>, vector<8x32xf32> -> vector<8x32xf32>
    %63 = arith.addf %58, %62 : vector<8x32xf32>
    %64 = vector.extract_strided_slice %57 {offsets = [8, 0], sizes = [8, 8], strides = [1, 1]} : vector<32x8xbf16> to vector<8x8xbf16>
    %65 = vector.extract_strided_slice %25 {offsets = [0, 96], sizes = [8, 32], strides = [1, 1]} : vector<8x192xf32> to vector<8x32xf32>
    %66 = arith.truncf %65 : vector<8x32xf32> to vector<8x32xbf16>
    %cst_19 = arith.constant dense<0.000000e+00> : vector<8x32xf32>
    %67 = tpu.matmul %64, %66, %cst_19 {dimension_numbers = #tpu.dot_dimension_numbers<[1], [0], [0], [1], [0, 0, 1, 1], [], []>} : vector<8x8xbf16>, vector<8x32xbf16>, vector<8x32xf32> -> vector<8x32xf32>
    %68 = arith.addf %63, %67 : vector<8x32xf32>
    %69 = vector.extract_strided_slice %57 {offsets = [16, 0], sizes = [8, 8], strides = [1, 1]} : vector<32x8xbf16> to vector<8x8xbf16>
    %70 = vector.extract_strided_slice %25 {offsets = [0, 128], sizes = [8, 32], strides = [1, 1]} : vector<8x192xf32> to vector<8x32xf32>
    %71 = arith.truncf %70 : vector<8x32xf32> to vector<8x32xbf16>
    %cst_20 = arith.constant dense<0.000000e+00> : vector<8x32xf32>
    %72 = tpu.matmul %69, %71, %cst_20 {dimension_numbers = #tpu.dot_dimension_numbers<[1], [0], [0], [1], [0, 0, 1, 1], [], []>} : vector<8x8xbf16>, vector<8x32xbf16>, vector<8x32xf32> -> vector<8x32xf32>
    %73 = arith.addf %68, %72 : vector<8x32xf32>
    %74 = vector.extract_strided_slice %57 {offsets = [24, 0], sizes = [8, 8], strides = [1, 1]} : vector<32x8xbf16> to vector<8x8xbf16>
    %75 = vector.extract_strided_slice %25 {offsets = [0, 160], sizes = [8, 32], strides = [1, 1]} : vector<8x192xf32> to vector<8x32xf32>
    %76 = arith.truncf %75 : vector<8x32xf32> to vector<8x32xbf16>
    %cst_21 = arith.constant dense<0.000000e+00> : vector<8x32xf32>
    %77 = tpu.matmul %74, %76, %cst_21 {dimension_numbers = #tpu.dot_dimension_numbers<[1], [0], [0], [1], [0, 0, 1, 1], [], []>} : vector<8x8xbf16>, vector<8x32xbf16>, vector<8x32xf32> -> vector<8x32xf32>
    %78 = arith.addf %73, %77 : vector<8x32xf32>
    %79 = arith.addf %0, %78 : vector<8x32xf32>
    %c2 = arith.constant 2 : index
    %c0_22 = arith.constant 0 : index
    %80 = vector.load %arg3[%c2, %c0_22] : memref<6x32xf32, #tpu.memory_space<vmem>>, vector<1x32xf32>
    %81 = vector.broadcast %80 : vector<1x32xf32> to vector<8x32xf32>
    %82 = arith.addf %79, %81 : vector<8x32xf32>
    %c3 = arith.constant 3 : index
    %c0_23 = arith.constant 0 : index
    %83 = vector.load %arg3[%c3, %c0_23] : memref<6x32xf32, #tpu.memory_space<vmem>>, vector<1x32xf32>
    %c4 = arith.constant 4 : index
    %c0_24 = arith.constant 0 : index
    %84 = vector.load %arg3[%c4, %c0_24] : memref<6x32xf32, #tpu.memory_space<vmem>>, vector<1x32xf32>
    %cst_25 = arith.constant dense<0.000000e+00> : vector<8xf32>
    %85 = vector.multi_reduction <add>, %82, %cst_25 [1] : vector<8x32xf32> to vector<8xf32>
    %86 = vector.shape_cast %85 : vector<8xf32> to vector<8x1xf32>
    %cst_26 = arith.constant 3.200000e+01 : f32
    %87 = vector.broadcast %cst_26 : f32 to vector<8x1xf32>
    %88 = arith.divf %86, %87 : vector<8x1xf32>
    %89 = vector.broadcast %88 : vector<8x1xf32> to vector<8x32xf32>
    %90 = arith.subf %82, %89 : vector<8x32xf32>
    %91 = arith.mulf %90, %90 : vector<8x32xf32>
    %cst_27 = arith.constant dense<0.000000e+00> : vector<8xf32>
    %92 = vector.multi_reduction <add>, %91, %cst_27 [1] : vector<8x32xf32> to vector<8xf32>
    %93 = vector.shape_cast %92 : vector<8xf32> to vector<8x1xf32>
    %cst_28 = arith.constant 3.200000e+01 : f32
    %94 = vector.broadcast %cst_28 : f32 to vector<8x1xf32>
    %95 = arith.divf %93, %94 : vector<8x1xf32>
    %cst_29 = arith.constant 9.99999974E-6 : f32
    %96 = vector.broadcast %cst_29 : f32 to vector<8x1xf32>
    %97 = arith.addf %95, %96 : vector<8x1xf32>
    %98 = math.rsqrt %97 : vector<8x1xf32>
    %99 = vector.broadcast %98 : vector<8x1xf32> to vector<8x32xf32>
    %100 = arith.mulf %90, %99 : vector<8x32xf32>
    %101 = vector.broadcast %83 : vector<1x32xf32> to vector<8x32xf32>
    %102 = arith.mulf %100, %101 : vector<8x32xf32>
    %103 = vector.broadcast %84 : vector<1x32xf32> to vector<8x32xf32>
    %104 = arith.addf %102, %103 : vector<8x32xf32>
    %105 = arith.truncf %104 : vector<8x32xf32> to vector<8x32xbf16>
    %c0_30 = arith.constant 0 : index
    %c0_31 = arith.constant 0 : index
    %106 = vector.load %arg4[%c0_30, %c0_31] : memref<32x128xbf16, #tpu.memory_space<vmem>>, vector<32x128xbf16>
    %cst_32 = arith.constant dense<0.000000e+00> : vector<8x128xf32>
    %107 = tpu.matmul %105, %106, %cst_32 {dimension_numbers = #tpu.dot_dimension_numbers<[1], [0], [0], [1], [0, 0, 1, 1], [], []>} : vector<8x32xbf16>, vector<32x128xbf16>, vector<8x128xf32> -> vector<8x128xf32>
    %c0_33 = arith.constant 0 : index
    %c0_34 = arith.constant 0 : index
    %108 = vector.load %arg5[%c0_33, %c0_34] : memref<1x128xf32, #tpu.memory_space<vmem>>, vector<1x128xf32>
    %109 = vector.broadcast %108 : vector<1x128xf32> to vector<8x128xf32>
    %110 = arith.addf %107, %109 : vector<8x128xf32>
    %111 = arith.mulf %110, %110 : vector<8x128xf32>
    %112 = arith.mulf %110, %111 : vector<8x128xf32>
    %cst_35 = arith.constant 4.471500e-02 : f32
    %113 = vector.broadcast %cst_35 : f32 to vector<8x128xf32>
    %114 = arith.mulf %113, %112 : vector<8x128xf32>
    %115 = arith.addf %110, %114 : vector<8x128xf32>
    %cst_36 = arith.constant 0.797884583 : f32
    %116 = vector.broadcast %cst_36 : f32 to vector<8x128xf32>
    %117 = arith.mulf %116, %115 : vector<8x128xf32>
    %118 = math.tanh %117 : vector<8x128xf32>
    %cst_37 = arith.constant 1.000000e+00 : f32
    %119 = vector.broadcast %cst_37 : f32 to vector<8x128xf32>
    %120 = arith.addf %119, %118 : vector<8x128xf32>
    %cst_38 = arith.constant 5.000000e-01 : f32
    %121 = vector.broadcast %cst_38 : f32 to vector<8x128xf32>
    %122 = arith.mulf %121, %120 : vector<8x128xf32>
    %123 = arith.mulf %110, %122 : vector<8x128xf32>
    %124 = arith.truncf %123 : vector<8x128xf32> to vector<8x128xbf16>
    %c0_39 = arith.constant 0 : index
    %c0_40 = arith.constant 0 : index
    %125 = vector.load %arg6[%c0_39, %c0_40] : memref<128x32xbf16, #tpu.memory_space<vmem>>, vector<128x32xbf16>
    %cst_41 = arith.constant dense<0.000000e+00> : vector<8x32xf32>
    %126 = tpu.matmul %124, %125, %cst_41 {dimension_numbers = #tpu.dot_dimension_numbers<[1], [0], [0], [1], [0, 0, 1, 1], [], []>} : vector<8x128xbf16>, vector<128x32xbf16>, vector<8x32xf32> -> vector<8x32xf32>
    %c5 = arith.constant 5 : index
    %c0_42 = arith.constant 0 : index
    %127 = vector.load %arg3[%c5, %c0_42] : memref<6x32xf32, #tpu.memory_space<vmem>>, vector<1x32xf32>
    %128 = vector.broadcast %127 : vector<1x32xf32> to vector<8x32xf32>
    %129 = arith.addf %126, %128 : vector<8x32xf32>
    %130 = arith.addf %82, %129 : vector<8x32xf32>
    %c0_43 = arith.constant 0 : index
    %c0_44 = arith.constant 0 : index
    %131 = vector.load %arg7[%c0_43, %c0_44] : memref<8x32xf32, #tpu.memory_space<vmem>>, vector<8x32xf32>
    tpu.vector_store %arg7[%c0_43, %c0_44], %130 {strides = array<i32>} : memref<8x32xf32, #tpu.memory_space<vmem>>, vector<8x32xf32>,
    return
  }
  func.func @transform_0(%arg0: i32) -> (i32, i32) {
    %c0_i32 = arith.constant 0 : i32
    %c0_i32_0 = arith.constant 0 : i32
    return %arg0, %c0_i32 : i32, i32
  }
  func.func @transform_1(%arg0: i32) -> (i32, i32) {
    %c0_i32 = arith.constant 0 : i32
    %c0_i32_0 = arith.constant 0 : i32
    %c0_i32_1 = arith.constant 0 : i32
    return %c0_i32, %c0_i32_0 : i32, i32
  }
  func.func @transform_2(%arg0: i32) -> (i32, i32) {
    %c0_i32 = arith.constant 0 : i32
    %c0_i32_0 = arith.constant 0 : i32
    %c0_i32_1 = arith.constant 0 : i32
    return %c0_i32, %c0_i32_0 : i32, i32
  }
  func.func @transform_3(%arg0: i32) -> (i32, i32) {
    %c0_i32 = arith.constant 0 : i32
    %c0_i32_0 = arith.constant 0 : i32
    %c0_i32_1 = arith.constant 0 : i32
    return %c0_i32, %c0_i32_0 : i32, i32
  }
  func.func @transform_4(%arg0: i32) -> (i32, i32) {
    %c0_i32 = arith.constant 0 : i32
    %c0_i32_0 = arith.constant 0 : i32
    %c0_i32_1 = arith.constant 0 : i32
    return %c0_i32, %c0_i32_0 : i32, i32
  }
  func.func @transform_5(%arg0: i32) -> (i32, i32) {
    %c0_i32 = arith.constant 0 : i32
    %c0_i32_0 = arith.constant 0 : i32
    %c0_i32_1 = arith.constant 0 : i32
    return %c0_i32, %c0_i32_0 : i32, i32
  }
  func.func @transform_6(%arg0: i32) -> (i32, i32) {
    %c0_i32 = arith.constant 0 : i32
    %c0_i32_0 = arith.constant 0 : i32
    return %arg0, %c0_i32 : i32, i32
  }
}

</mosaic_0001>

<bundles_post_ra>
// kernel: tpu_custom_call.1
= control target key start
LH: loop header
LB: loop body
LE: loop exit
PB: predicated region body
PF: predicated region fallthrough
CT: control target
= control target key end

     0   :  { %11 = vsyncpa [#allocation3], 0  ;;  %s1690_s0 = inlined_call_operand.vmem [shape: f32[16,32], index: 0, kind: input, shape index: {}]   ;;  %s1691_s1 = inlined_call_operand.vmem [shape: bf16[32,192], index: 1, kind: input, shape index: {}]   ;;  %s1692_s2 = inlined_call_operand.vmem [shape: f32[6,32], index: 2, kind: input, shape index: {}]   ;;  %s1693_s3 = inlined_call_operand.vmem [shape: bf16[32,128], index: 3, kind: input, shape index: {}]   ;;  %s1694_s4 = inlined_call_operand.vmem [shape: f32[1,128], index: 4, kind: input, shape index: {}]   ;;  %s1695_s5 = inlined_call_operand.vmem [shape: bf16[128,32], index: 5, kind: input, shape index: {}]   ;;  %s1696_s6 = inlined_call_operand.hbm [shape: f32[16,32], index: 6, kind: output, shape index: {}]  }
   0x1   :  { %13 = vsyncpa [#allocation3 + $0x1], 0  ;;  %s1430_s21 = smov 0   ;;  %s1432_s22 = smov 0  }
   0x2   :  { %s1434_s23 = smov 0   ;;  %s1436_s24 = smov 0  }
   0x3 LB: > { %s1451_s25 = sadd.s32 4294967295, %s1380_s24   ;;  %s1084_s26 = sadd.s32 4294967294, %s1380_s24   ;;  %s1380_s24 = sphi %s1436_s24, %s1702_s24   ;;  %s1376_s23 = sphi %s1434_s23, %s1701_s23   ;;  %s1372_s22 = sphi %s1432_s22, %s1700_s22   ;;  %s1368_s21 = sphi %s1430_s21, %s1699_s21  }
   0x4   : > { %s1455_s27 = sadd.s32 1, %s1380_s24   ;;  %s157_s28 = sadd.s32 1, %s1376_s23 }
   0x5   : > { %s154_s29 = ssub.s32 %s1380_s24, %s1455_s27  ;;  %p167_p0 = scmp.ne.s32.totalorder %s1376_s23, %s1372_s22 }
   0x6   : > { %p155_p1 = scmp.eq.s32.totalorder %s154_s29, 0  ;;  %p168_p2 = scmp.eq.s32.totalorder %s1451_s25, 1 }
   0x7   : > { %p173_p3 = scmp.ne.s32.totalorder %s1372_s22, %s1368_s21  ;;  %p174_p4 = scmp.eq.s32.totalorder %s1084_s26, 1 }
   0x8   : > { %s1466_s30 = scalar_select %p155_p1, %s1376_s23, %s157_s28  }
   0x9   : > { %p1468_p5 = por %p168_p2, %p167_p0  ;;  %p1472_p6 = por %p174_p4, %p173_p3 }
   0xa   : > { %p1087_p7 = scmp.ge.s32.totalorder %s1380_s24, 1  ;;  %p214_p8 = scmp.lt.s32.totalorder %s1380_s24, 3 }
   0xc   : > { %p215_p9 = pnand %p1087_p7, %p214_p8 }
   0xd   : > { %p243_p10 = scmp.lt.s32.totalorder (!%p215_p9), %s1451_s25, 1  ;;  %vm251_vm0 = vcmask (!%p215_p9), 261120   ;;  %v1280_v7 = vld [vmem:[%s1691_s1 + $0x4] ss:$8 sps:$4 sm:$0xff] (!%p215_p9)   ;;  %v1282_v8 = vld [vmem:[%s1691_s1] ss:$8 sps:$4 sm:$0xff] (!%p215_p9)  }
   0xe   : > { %218 = sbr.rel (%p215_p9) target bundleno = 2240 (0x8c0), region = 44  ;;  %v1283_v9 = vld [vmem:[%s1691_s1 + $0x14] ss:$8 sps:$4 sm:$0xff] (!%p215_p9)   ;;  %304 = vmatprep.subr.bf16.mxu1 (!%p215_p9), %v1280_v7  ;;  %v1382_v10 = vmov (!%p215_p9), 0   ;;  %v1285_v11 = vld [vmem:[%s1691_s1 + $0x10] ss:$8 sps:$4 sm:$0xff] (!%p215_p9)  }
   0xf   : > { %336 = vmatprep.mubr.bf16.mxu1 (!%p215_p9), %v1382_v10  ;;  %305 = vmatpush1.bf16.msra.mxu1 (!%p215_p9), %v1282_v8  ;;  %v1090_v16 = vld [vmem:[%s1692_s2] ss:$0 sm:$0xff] (!%p215_p9)  ;;  %v1091_v18 = vld [vmem:[%s1692_s2 + $0x1] ss:$0 sm:$0xff] (!%p215_p9)  ;;  %v1383_v22 = vmov (!%p215_p9), 0.0   ;;  %vm1384_vm1 = vmmov (!%p215_p9), 0  }
  0x10   : > { %306 = vmatprep.subr.bf16.mxu1 (!%p215_p9), %v1283_v9  ;;  %1171 = vmatprep.subr.bf16.mxu0 (!%p215_p9), %v1383_v22  ;;  %s1385_s11 = smov (!%p215_p9), 120   ;;  %s1386_s12 = smov (!%p215_p9), 96   ;;  %vm349_vm2 = vcmask (!%p215_p9), 64512   ;;  %vm599_vm3 = vcmask (!%p215_p9), 1043456  }
  0x11   : > { %1173 = vmatprep.mubr.msk.bf16.mxu0 (!%p215_p9), %vm1384_vm1, %v1383_v22  ;;  %s1388_s14 = smov (!%p215_p9), 80   ;;  %s1389_s15 = smov (!%p215_p9), 72  }
  0x12   : > { %s1390_s16 = smov (!%p215_p9), 112   ;;  %s1391_s17 = smov (!%p215_p9), 104  }
  0x13   : > { %307 = vmatpush1.bf16.msra.mxu1 (!%p215_p9), %v1285_v11  ;;  %s1392_s18 = smov (!%p215_p9), 32   ;;  %s1393_s19 = smov (!%p215_p9), 64  }
  0x14   : > { %1153 = vmatprep.subr.bf16.mxu1 (!%p215_p9), %v1383_v22  ;;  %s1122_s28 = sshll.u32 (!%p215_p9), %s1451_s25, 7 }
  0x15   : > { %s244_s9 = scalar_select %p243_p10, %s1451_s25, 1 }
  0x17   : > { %s1089_s10 = sshll.u32 %s244_s9, 3 }
  0x18   : > { %s246_s13 = scalar_lea.vmem %s1690_s0, %s1089_s10 }
  0x19   : > { %v1483_v0 = vld [vmem:[%s246_s13] sm:$0xff]  ;;  %s1387_s13 = smov 88  }
  0x1a   : > { %v252_v1 = vsel %vm251_vm0, %v1483_v0, 0.0 }
  0x1b   : > { %253 = vadd.xlane.f32.xlu0 %v252_v1 }
  0xa8   : > { %v254_v2 = vpop.xlane.xlu0 %253 }
  0xa9   : > { %v256_v3 = vmul.f32 0.03125, %v254_v2 }
  0xab   : > { %v257_v4 = vsub.f32 %v1483_v0, %v256_v3 }
  0xad   : > { %v258_v5 = vmul.f32 %v257_v4, %v257_v4 }
  0xaf   : > { %v259_v6 = vsel %vm251_vm0, %v258_v5, 0.0 }
  0xb0   : > { %260 = vadd.xlane.f32.xlu0 %v259_v6 }
 0x13d   : > { %v261_v12 = vpop.xlane.xlu0 %260 }
 0x13e   : > { %v262_v13 = vmul.f32 0.03125, %v261_v12 }
 0x140   : > { %v263_v14 = vadd.f32 1e-05, %v262_v13 }
 0x142   : > { %1296 = vrsqrt.f32 %v263_v14 }
 0x14c   : > { %v1297_v15 = vpop.eup %1296 }
 0x14d   : > { %v265_v17 = vmul.f32 %v1297_v15, %v257_v4 }
 0x14f   : > { %v270_v19 = vmul.f32 %v1090_v16, %v265_v17 }
 0x151   : > { %v275_v20 = vadd.f32 %v1091_v18, %v270_v19 }
 0x153   : > { %v276_v21 = vpack.c.bf16 %v275_v20, %v275_v20 }
 0x155   : > { %1096 = vmatmul.mubr.msk.bf16.vlgmr.msra.gmra.mrb[0].mxu1 %vm251_vm0, %v276_v21 }
 0x156   : > { %1155 = vmatprep.mubr.msk.bf16.mxu1 %vm1384_vm1, %v1383_v22 }
 0x228   : > { %v338_v23 = vpop.f32.mrb[0].mxu1 }
 0x229   : > { %v1514_v24 = vpack.c.bf16 %v338_v23, %v338_v23  ;;  %v1516_v25 = vpop.f32.mrb[1].mxu1 }
 0x22a   : > { %v342_v26 = vpop.f32.mrb[2].mxu1  ;;  %v691_v18 = vpack.c.bf16 %v1516_v25, %v1516_v25 }
 0x22b   : > { %396 = vrot.lane.b32.xlu0 %v1514_v24, %s1385_s11  ;;  %347 = vrot.lane.b32.xlu1 %v1514_v24, %s1386_s12  ;;  %v343_v27 = vpop.f32.mrb[3].mxu1 }
 0x22f   : > { %398 = vrot.lane.b32.xlu1 %v1514_v24, %s1387_s13 }
 0x233   : > { %448 = vrot.lane.b32.xlu1 %v1514_v24, %s1388_s14  ;;  %s1394_s14 = smov [#allocation2]  }
 0x237   : > { %498 = vrot.lane.b32.xlu1 %v1514_v24, %s1389_s15  ;;  %s1322_s15 = sshll.u32 %s1394_s14, 4  ;;  %s1323_s15 = int_to_ptr.vmem [resolvable:$false] %s1322_s15 }
 0x23b   : > { %446 = vrot.lane.b32.xlu1 %v1514_v24, %s1390_s16  ;;  %s1324_s16 = scalar_lea.vmem %s1323_s15, 256 }
 0x23f   : > { %496 = vrot.lane.b32.xlu1 %v1514_v24, %s1391_s17 }
 0x29d   : > { %v348_v28 = vpop.permute.xlu1 %347  ;;  %v397_v35 = vpop.permute.xlu0 %396 }
 0x29e   : > { %v354_v29 = vsel %vm349_vm2, %v348_v28, 0 }
 0x29f   : > { %1154 = vmatpush3.bf16.xpose.msra.mxu1 %v354_v29 }
 0x2a0   : > { %1159 = vmatprep.subr.bf16.mxu1 %v1383_v22 }
 0x2a1   : > { %v399_v30 = vpop.permute.xlu1 %398 }
 0x2a2   : > { %v404_v32 = vsel %vm349_vm2, %v399_v30, 0 }
 0x2a5   : > { %v449_v31 = vpop.permute.xlu1 %448 }
 0x2a6   : > { %1156 = vmatmul.mubr.msk.bf16.vlgmr.msra.gmra.mrb[4].mxu1 %vm349_vm2, %v1514_v24  ;;  %v454_v37 = vsel %vm349_vm2, %v449_v31, 0 }
 0x2a7   : > { %1160 = vmatpush3.bf16.xpose.msra.mxu1 %v404_v32  ;;  %1161 = vmatprep.mubr.msk.bf16.mxu1 %vm1384_vm1, %v1383_v22 }
 0x2a8   : > { %1165 = vmatprep.subr.bf16.mxu1 %v1383_v22 }
 0x2a9   : > { %v499_v33 = vpop.permute.xlu1 %498 }
 0x2aa   : > { %v504_v34 = vsel %vm349_vm2, %v499_v33, 0 }
 0x2ab   : > { %1172 = vmatpush3.bf16.xpose.msra.mxu0 %v504_v34 }
 0x2ac   : > { %1183 = vmatprep.subr.bf16.mxu0 %v1383_v22 }
 0x2ad   : > { %v447_v36 = vpop.permute.xlu1 %446 }
 0x2ae   : > { %1162 = vmatmul.mubr.msk.bf16.vlgmr.msra.gmra.mrb[8].mxu1 %vm349_vm2, %v397_v35 }
 0x2af   : > { %1166 = vmatpush3.bf16.xpose.msra.mxu1 %v454_v37  ;;  %1167 = vmatprep.mubr.msk.bf16.mxu1 %vm1384_vm1, %v1383_v22 }
 0x2b0   : > { %1177 = vmatprep.subr.bf16.mxu1 %v1383_v22 }
 0x2b1   : > { %v497_v38 = vpop.permute.xlu1 %496 }
 0x2b2   : > { %1174 = vmatmul.mubr.msk.bf16.vlgmr.msra.gmra.mrb[0].mxu0 %vm349_vm2, %v497_v38  ;;  %v696_v38 = vsel %vm599_vm3, %v691_v18, 0 }
 0x2b3   : > { %1185 = vmatprep.mubr.msk.bf16.mxu0 %vm1384_vm1, %v1383_v22 }
 0x2b6   : > { %1168 = vmatmul.mubr.msk.bf16.vlgmr.msra.gmra.mrb[12].mxu1 %vm349_vm2, %v447_v36 }
 0x2b7   : > { %1179 = vmatprep.mubr.msk.bf16.mxu1 %vm1384_vm1, %v1383_v22 }
 0x379   : > { %v390_v39 = vpop.f32.mrb[4].mxu1 }
 0x37a   : > { %v1157_v40 = vpop.f32.mrb[5].mxu1  ;;  %v546_v41 = vsel %vm349_vm2, %v390_v39, -inf }
 0x37b   : > { %547 = vmax.xlane.f32.xlu1 %v546_v41  ;;  %v393_v42 = vpop.f32.mrb[6].mxu1 }
 0x37c   : > { %v1158_v43 = vpop.f32.mrb[7].mxu1 }
 0x381   : > { %v440_v44 = vpop.f32.mrb[8].mxu1 }
 0x382   : > { %v1163_v45 = vpop.f32.mrb[9].mxu1  ;;  %v549_v46 = vsel %vm349_vm2, %v440_v44, -inf }
 0x383   : > { %550 = vmax.xlane.f32.xlu0 %v549_v46  ;;  %v443_v47 = vpop.f32.mrb[10].mxu1 }
 0x384   : > { %v1164_v48 = vpop.f32.mrb[11].mxu1 }
 0x385   : > { %v540_v49 = vpop.f32.mrb[0].mxu0 }
 0x386   : > { %v1175_v50 = vpop.f32.mrb[1].mxu0  ;;  %v555_v51 = vsel %vm349_vm2, %v540_v49, -inf }
 0x387   : > { %v543_v52 = vpop.f32.mrb[2].mxu0  ;;  %556 = vmax.xlane.f32.xlu0 %v555_v51 }
 0x388   : > { %v1176_v53 = vpop.f32.mrb[3].mxu0 }
 0x389   : > { %v490_v54 = vpop.f32.mrb[12].mxu1 }
 0x38a   : > { %v1169_v55 = vpop.f32.mrb[13].mxu1  ;;  %v552_v56 = vsel %vm349_vm2, %v490_v54, -inf }
 0x38b   : > { %553 = vmax.xlane.f32.xlu1 %v552_v56  ;;  %v493_v57 = vpop.f32.mrb[14].mxu1 }
 0x38c   : > { %v1170_v58 = vpop.f32.mrb[15].mxu1 }
 0x39c   : > { %594 = vrot.lane.b32.xlu1 %v1514_v24, %s1392_s18  ;;  %s240_s18 = sand.u32 1, %s1372_s22  }
 0x39d   : > { %s1012_s25 = scalar_lea.sflag [#allocation3], %s240_s18 }
 0x408   : > { %v548_v59 = vpop.xlane.xlu1 %547 }
 0x409   : > { %v558_v60 = vsub.f32 %v390_v39, %v548_v59 }
 0x40b   : > { %v562_v61 = vmul.f32 1.442695, %v558_v60  ;;  %v1105_v60 = vld [vmem:[%s1692_s2 + $0x2] ss:$0 sm:$0xff] }
 0x40d   : > { %1298 = vpow2.f32 %v562_v61 }
 0x410   : > { %v551_v62 = vpop.xlane.xlu0 %550 }
 0x411   : > { %v559_v63 = vsub.f32 %v440_v44, %v551_v62 }
 0x413   : > { %v564_v4 = vmul.f32 1.442695, %v559_v63 }
 0x414   : > { %v557_v1 = vpop.xlane.xlu0 %556 }
 0x415   : > { %v561_v2 = vsub.f32 %v540_v49, %v557_v1 }
 0x417   : > { %v1299_v3 = vpop.eup %1298  ;;  %v568_v5 = vmul.f32 1.442695, %v561_v2 }
 0x418   : > { %v554_v6 = vpop.xlane.xlu1 %553  ;;  %v570_v7 = vsel %vm349_vm2, %v1299_v3, 0.0 }
 0x419   : > { %1300 = vpow2.f32 %v568_v5  ;;  %v560_v8 = vsub.f32 %v490_v54, %v554_v6  ;;  %571 = vadd.xlane.f32.xlu1 %v570_v7  ;;  %v1286_v6 = vld [vmem:[%s1693_s3] sm:$0xff]  }
 0x41a   : > { %1302 = vpow2.f32 %v564_v4 }
 0x41b   : > { %v566_v9 = vmul.f32 1.442695, %v560_v8 }
 0x41c   : > { %v595_v10 = vpop.permute.xlu1 %594 }
 0x41d   : > { %1304 = vpow2.f32 %v566_v9  ;;  %v601_v11 = vsel %vm599_vm3, %v595_v10, 0 }
 0x41e   : > { %1178 = vmatpush3.bf16.msra.mxu1 %v601_v11  ;;  %v1106_v11 = vld [vmem:[%s1692_s2 + $0x3] ss:$0 sm:$0xff] }
 0x41f   : > { %1189 = vmatprep.subr.bf16.mxu1 %v1383_v22 }
 0x423   : > { %v1301_v12 = vpop.eup %1300 }
 0x424   : > { %v579_v13 = vsel %vm349_vm2, %v1301_v12, 0.0  ;;  %v1303_v14 = vpop.eup %1302 }
 0x425   : > { %580 = vadd.xlane.f32.xlu0 %v579_v13  ;;  %v573_v16 = vsel %vm349_vm2, %v1303_v14, 0.0  ;;  %v1107_v13 = vld [vmem:[%s1692_s2 + $0x4] ss:$0 sm:$0xff] }
 0x427   : > { %v1305_v15 = vpop.eup %1304 }
 0x428   : > { %v576_v17 = vsel %vm349_vm2, %v1305_v15, 0.0 }
 0x429   : > { %574 = vadd.xlane.f32.xlu0 %v573_v16  ;;  %577 = vadd.xlane.f32.xlu1 %v576_v17  ;;  %v1288_v17 = vld [vmem:[%s1695_s5] sm:$0xff]  }
 0x43a   : > { %742 = vrot.lane.b32.xlu1 %v691_v18, %s1386_s12  ;;  %v1289_v18 = vld [vmem:[%s1695_s5 + $0x8] sm:$0xff]   ;;  %s1647_s12 = scalar_lea.hbm %s1696_s6, %s1122_s28 }
 0x43f   : > { %643 = vrot.lane.b32.xlu0 %v1514_v24, %s1393_s19  ;;  %s1088_s19 = sshll.u32 %s240_s18, 3 }
 0x440   : > { %s242_s29 = scalar_lea.vmem [#allocation2], %s1088_s19 }
 0x441   : > { %s1025_s9 = sshll.u32 %s242_s29, 4  ;;  %s1649_s9 = int_to_ptr.vmem [resolvable:$true] %s1025_s9 }
 0x442   : > { %s1318_s13 = scalar_lea.vmem %s1649_s9, 128  ;;  %p1325_p0 = scmp.lt.s32.totalorder %s1649_s9, %s1323_s15 }
 0x443   : > { %p1319_p11 = scmp.ne.s32.totalorder %s1649_s9, %s1318_s13  ;;  %p1326_p1 = scmp.lt.s32.totalorder %s1324_s16, %s1318_s13 }
 0x445   : > { %p1320_p12 = pnand %p1319_p11, %p1468_p5  ;;  %p1327_p2 = por %p1326_p1, %p1325_p0 }
 0x447   : > { %p1321_p13 = pneg %p1320_p12 }
 0x449   : > { %p1328_p3 = pnand %p1327_p2, %p1321_p13 }
 0x4a6   : > { %v572_v19 = vpop.xlane.xlu1 %571 }
 0x4a7   : > { %1306 = vrcp.f32 %v572_v19  ;;  %v1290_v19 = vld [vmem:[%s1695_s5 + $0x10] sm:$0xff]  }
 0x4b1   : > { %v1307_v25 = vpop.eup %1306 }
 0x4b2   : > { %v581_v20 = vpop.xlane.xlu0 %580  ;;  %v586_v30 = vmul.f32 %v1307_v25, %v1299_v3  ;;  %v1108_v25 = vld [vmem:[%s1694_s4] ss:$0 sm:$0xff] }
 0x4b6   : > { %v575_v21 = vpop.xlane.xlu0 %574  ;;  %v578_v23 = vpop.xlane.xlu1 %577 }
 0x4b7   : > { %1308 = vrcp.f32 %v575_v21  ;;  %v1292_v21 = vld [vmem:[%s1695_s5 + $0x20] sm:$0xff]  }
 0x4b8   : > { %1310 = vrcp.f32 %v578_v23  ;;  %v1293_v23 = vld [vmem:[%s1695_s5 + $0x28] sm:$0xff]  }
 0x4b9   : > { %1312 = vrcp.f32 %v581_v20  ;;  %v1291_v20 = vld [vmem:[%s1695_s5 + $0x18] sm:$0xff]  }
 0x4ba   : > { %v644_v26 = vpop.permute.xlu0 %643  ;;  %v743_v32 = vpop.permute.xlu1 %742 }
 0x4bb   : > { %v649_v27 = vsel %vm599_vm3, %v644_v26, 0  ;;  %v748_v36 = vsel %vm599_vm3, %v743_v32, 0  ;;  %v1294_v26 = vld [vmem:[%s1695_s5 + $0x30] sm:$0xff]  }
 0x4bc   : > { %1184 = vmatpush3.bf16.msra.mxu0 %v649_v27  ;;  %v1295_v27 = vld [vmem:[%s1695_s5 + $0x38] sm:$0xff]  }
 0x4bd   : > { %1195 = vmatprep.subr.bf16.mxu0 %v1383_v22 }
 0x4c1   : > { %v1309_v28 = vpop.eup %1308 }
 0x4c2   : > { %v1311_v29 = vpop.eup %1310  ;;  %v587_v31 = vmul.f32 %v1309_v28, %v1303_v14 }
 0x4c3   : > { %v1313_v24 = vpop.eup %1312  ;;  %v588_v33 = vmul.f32 %v1311_v29, %v1305_v15 }
 0x4c4   : > { %v590_v34 = vpack.c.bf16 %v587_v31, %v586_v30  ;;  %v589_v35 = vmul.f32 %v1313_v24, %v1301_v12 }
 0x4c6   : > { %1186 = vmatmul.mubr.msk.bf16.vlgmr.msra.gmra.mrb[4].mxu0 %vm349_vm2, %v590_v34  ;;  %v593_v37 = vrot.slane %v590_v34, 4  ;;  %v591_v39 = vpack.c.bf16 %v589_v35, %v588_v33 }
 0x4c7   : > { %1196 = vmatpush3.bf16.msra.mxu0 %v748_v36  ;;  %1197 = vmatprep.mubr.msk.bf16.mxu0 %vm1384_vm1, %v1383_v22 }
 0x4c8   : > { %1180 = vmatmul.mubr.msk.bf16.vlgmr.msra.gmra.mrb[16].mxu1 %vm349_vm2, %v593_v37  ;;  %1209 = vmatprep.subr.bf16.mxu0 %v1383_v22  ;;  %v740_v40 = vrot.slane %v591_v39, 4 }
 0x4c9   : > { %1190 = vmatpush3.bf16.msra.mxu1 %v696_v38  ;;  %1191 = vmatprep.mubr.msk.bf16.mxu1 %vm1384_vm1, %v1383_v22 }
 0x4ca   : > { %1201 = vmatprep.subr.bf16.mxu1 %v1383_v22 }
 0x4ce   : > { %1198 = vmatmul.mubr.msk.bf16.vlgmr.msra.gmra.mrb[8].mxu0 %vm349_vm2, %v740_v40 }
 0x4cf   : > { %1225 = vmatprep.mubr.msk.bf16.mxu0 %vm1384_vm1, %v1383_v22  ;;  %1210 = vmatpush3.bf16.msra.mxu0 %v1288_v17 }
 0x4d0   : > { %1192 = vmatmul.mubr.msk.bf16.vlgmr.msra.gmra.mrb[20].mxu1 %vm349_vm2, %v591_v39  ;;  %1211 = vmatprep.subr.bf16.mxu0 %v1383_v22 }
 0x4d1   : > { %1205 = vmatprep.mubr.msk.bf16.mxu1 %vm1384_vm1, %v1383_v22  ;;  %1202 = vmatpush3.bf16.msra.mxu1 %v1286_v6 }
 0x4d2   : > { %1203 = vmatprep.subr.bf16.mxu1 %v1383_v22 }
 0x4d3   : > { %1212 = vmatpush3.bf16.msra.mxu0 %v1289_v18 }
 0x4d4   : > { %1213 = vmatprep.subr.bf16.mxu0 %v1383_v22 }
 0x4d7   : > { %1214 = vmatpush3.bf16.msra.mxu0 %v1290_v19 }
 0x4d8   : > { %1215 = vmatprep.subr.bf16.mxu0 %v1383_v22 }
 0x4db   : > { %1216 = vmatpush3.bf16.msra.mxu0 %v1291_v20 }
 0x4dc   : > { %1217 = vmatprep.subr.bf16.mxu0 %v1383_v22 }
 0x4df   : > { %1218 = vmatpush3.bf16.msra.mxu0 %v1292_v21 }
 0x4e0   : > { %1219 = vmatprep.subr.bf16.mxu0 %v1383_v22 }
 0x4e3   : > { %1220 = vmatpush3.bf16.msra.mxu0 %v1293_v23 }
 0x4e4   : > { %1221 = vmatprep.subr.bf16.mxu0 %v1383_v22 }
 0x4e7   : > { %1222 = vmatpush3.bf16.msra.mxu0 %v1294_v26 }
 0x4e8   : > { %1223 = vmatprep.subr.bf16.mxu0 %v1383_v22 }
 0x4eb   : > { %1224 = vmatpush3.bf16.msra.mxu0 %v1295_v27 }
 0x599   : > { %v685_v41 = vpop.f32.mrb[4].mxu0 }
 0x59a   : > { %v1187_v42 = vpop.f32.mrb[5].mxu0 }
 0x59b   : > { %v637_v43 = vpop.f32.mrb[16].mxu1  ;;  %v688_v44 = vpop.f32.mrb[6].mxu0 }
 0x59c   : > { %v686_v45 = vadd.f32 %v685_v41, %v637_v43  ;;  %v1181_v46 = vpop.f32.mrb[17].mxu1  ;;  %v1188_v47 = vpop.f32.mrb[7].mxu0  ;;  %v1112_v41 = vld [vmem:[%s1692_s2 + $0x5] ss:$0 sm:$0xff] }
 0x59d   : > { %v640_v48 = vpop.f32.mrb[18].mxu1 }
 0x59e   : > { %v1182_v49 = vpop.f32.mrb[19].mxu1 }
 0x5a1   : > { %v784_v50 = vpop.f32.mrb[8].mxu0 }
 0x5a2   : > { %v1199_v51 = vpop.f32.mrb[9].mxu0 }
 0x5a3   : > { %v732_v52 = vpop.f32.mrb[20].mxu1  ;;  %v787_v53 = vpop.f32.mrb[10].mxu0 }
 0x5a4   : > { %v738_v54 = vadd.f32 %v732_v52, %v686_v45  ;;  %v1193_v55 = vpop.f32.mrb[21].mxu1  ;;  %v1200_v56 = vpop.f32.mrb[11].mxu0 }
 0x5a5   : > { %v735_v57 = vpop.f32.mrb[22].mxu1 }
 0x5a6   : > { %v790_v58 = vadd.f32 %v784_v50, %v738_v54  ;;  %v1194_v59 = vpop.f32.mrb[23].mxu1 }
 0x5a8   : > { %v791_v61 = vadd.f32 %v790_v58, %v1483_v0  ;;  %v1287_v0 = vld [vmem:[%s1693_s3 + $0x8] sm:$0xff]  }
 0x5a9   : > { %1204 = vmatpush3.bf16.msra.mxu1 %v1287_v0 }
 0x5aa   : > { %v1584_v62 = vadd.f32 %v1105_v60, %v791_v61 }
 0x5ac   : > { %v800_v63 = vsel %vm251_vm0, %v1584_v62, 0.0 }
 0x5ad   : > { %801 = vadd.xlane.f32.xlu1 %v800_v63 }
 0x63a   : > { %v802_v1 = vpop.xlane.xlu1 %801 }
 0x63b   : > { %v803_v2 = vmul.f32 0.03125, %v802_v1 }
 0x63d   : > { %v804_v3 = vsub.f32 %v1584_v62, %v803_v2 }
 0x63f   : > { %v805_v4 = vmul.f32 %v804_v3, %v804_v3 }
 0x641   : > { %v806_v5 = vsel %vm251_vm0, %v805_v4, 0.0 }
 0x642   : > { %807 = vadd.xlane.f32.xlu0 %v806_v5 }
 0x6cf   : > { %v808_v7 = vpop.xlane.xlu0 %807 }
 0x6d0   : > { %v809_v8 = vmul.f32 0.03125, %v808_v7 }
 0x6d2   : > { %v810_v9 = vadd.f32 1e-05, %v809_v8 }
 0x6d4   : > { %1314 = vrsqrt.f32 %v810_v9 }
 0x6de   : > { %v1315_v10 = vpop.eup %1314 }
 0x6df   : > { %v812_v12 = vmul.f32 %v1315_v10, %v804_v3 }
 0x6e1   : > { %v817_v14 = vmul.f32 %v1106_v11, %v812_v12 }
 0x6e3   : > { %v822_v15 = vadd.f32 %v1107_v13, %v817_v14 }
 0x6e5   : > { %v823_v16 = vpack.c.bf16 %v822_v15, %v822_v15 }
 0x6e7   : > { %1206 = vmatmul.mubr.msk.bf16.vlgmr.msra.gmra.mrb[24].mxu1 %vm251_vm0, %v823_v16 }
 0x7ba   : > { %v884_v28 = vpop.f32.mrb[24].mxu1 }
 0x7bb   : > { %v885_v29 = vadd.f32 %v1108_v25, %v884_v28  ;;  %v1207_v30 = vpop.f32.mrb[25].mxu1 }
 0x7bc   : > { %v887_v31 = vpop.f32.mrb[26].mxu1 }
 0x7bd   : > { %v890_v24 = vmul.f32 %v885_v29, %v885_v29  ;;  %v1208_v32 = vpop.f32.mrb[27].mxu1 }
 0x7bf   : > { %v891_v33 = vmul.f32 %v890_v24, %v885_v29 }
 0x7c1   : > { %v892_v34 = vmul.f32 0.044715, %v891_v33 }
 0x7c3   : > { %v893_v35 = vadd.f32 %v892_v34, %v885_v29 }
 0x7c5   : > { %v894_v36 = vmul.f32 0.7978846, %v893_v35 }
 0x7c7   : > { %1316 = vtanh.f32 %v894_v36 }
 0x7d1   : > { %v1317_v37 = vpop.eup %1316 }
 0x7d2   : > { %v896_v22 = vadd.f32 1.0, %v1317_v37 }
 0x7d4   : > { %v897_v38 = vmul.f32 0.5, %v896_v22 }
 0x7d6   : > { %v898_v39 = vmul.f32 %v897_v38, %v885_v29 }
 0x7d8   : > { %v899_v40 = vpack.c.bf16 %v898_v39, %v898_v39 }
 0x7da   : > { %1226 = vmatmul.mubr.bf16.vlgmr.msra.gmra.mrb[12].mxu0 %v899_v40 }
 0x8ad   : > { %v1003_v42 = vpop.f32.mrb[12].mxu0 }
 0x8ae   : > { %v1004_v43 = vadd.f32 %v1112_v41, %v1003_v42  ;;  %v1227_v44 = vpop.f32.mrb[13].mxu0 }
 0x8af   : > { %v1006_v45 = vpop.f32.mrb[14].mxu0 }
 0x8b0   : > { %v1009_v46 = vadd.f32 %v1004_v43, %v1584_v62  ;;  %v1228_v47 = vpop.f32.mrb[15].mxu0 }
 0x8b2   : > { %1010 = vst.msk [vmem:[%s242_s29] sm:$0xff] %vm251_vm0, %v1009_v46 }
 0x8b3   : > { %1331 = shalt.err (!%p1328_p3)
}
 0x8b4   : > { %s1332_s17 = scalar_lea.hbm %s1647_s12, 128  ;;  %s1336_s20 = scalar_lea.hbm %s1696_s6, 256 }
 0x8b5   : > { %p1333_p4 = scmp.ne.s32.totalorder %s1647_s12, %s1332_s17  ;;  %p1337_p9 = scmp.lt.u32.totalorder %s1647_s12, %s1696_s6 }
 0x8b6   : > { %p1338_p10 = scmp.lt.u32.totalorder %s1336_s20, %s1332_s17  ;;  %p1340_p12 = scmp.lt.u32.totalorder %s1332_s17, %s1647_s12 }
 0x8b7   : > { %p1334_p7 = pnand %p1333_p4, %p1468_p5 }
 0x8b8   : > { %p1339_p11 = por %p1338_p10, %p1337_p9 }
 0x8b9   : > { %p1335_p8 = pneg %p1334_p7 }
 0x8ba   : > { %p1341_p13 = por %p1340_p12, %p1339_p11 }
 0x8bc   : > { %p1342_p0 = pnand %p1341_p13, %p1335_p8 }
 0x8be   : > { %1345 = shalt.err (!%p1342_p0)
}
 0x8bf   : > { %1229 = dma.vmem_to_hbm [thread:$0]  (%p1468_p5), %s1649_s9, 128, %s1647_s12, %s1012_s25  }
 0x8c0 PF: > { %p1235_p1 = scmp.ge.s32.totalorder %s1380_s24, 2  ;;  %s1037_s29 = sand.u32 1, %s1368_s21  }
 0x8c1   : > { %s1038_s10 = scalar_lea.sflag [#allocation3], %s1037_s29 }
 0x8c2   : > { %p1232_p2 = pnand %p1235_p1, %p1472_p6 }
 0x8c4   : > { %1363 = dma.done.wait (!%p1232_p2), %s1038_s10, 128  }
 0x8c5   : > { %1365 = vsyncadd (!%p1232_p2), %s1038_s10, 4294967168  ;;  %p16_p3 = scmp.ge.s32.totalorder %s1455_s27, 4   ;;  %s1699_s21 = smov %s1372_s22 }
 0x8c6   : > { %s1700_s22 = smov %s1376_s23  ;;  %s1701_s23 = smov %s1466_s30 }
 0x8c7   : > { %s1702_s24 = smov %s1455_s27  ;;  %18 = sbr.rel (!%p16_p3) target bundleno = 3 (0x3), region = 79 }
 0x8ce   :  { %1043 = vsyncpa [#allocation3], 1 }
 0x8cf   :  { %1045 = vsyncpa [#allocation3 + $0x1], 1 }

</bundles_post_ra>
